<compile_context>
chip_gen: v7x
topology: tpu7x:2x2x1
jax: 0.10.0
libtpu: 0.0.40
codegen_flags: <defaults>
</compile_context>

<pallas_src>
import jax
import jax.numpy as jnp
from jax import lax
from jax.experimental import pallas as pl
from jax.experimental.pallas import tpu as pltpu

LN_EPS = 1e-5  # torch.nn.LayerNorm default eps


# --------------------------------------------------------------------------- #
# Helpers
# --------------------------------------------------------------------------- #
def _round_up(x, m):
    return ((x + m - 1) // m) * m


def _cdiv(a, b):
    return (a + b - 1) // b


def _vmem_capacity_bytes():
    """Physical VMEM per TensorCore; conservative 64 MiB (v7x) fallback."""
    try:
        info = pltpu.get_tpu_info()
        cap = getattr(info, "vmem_capacity_bytes", None)
        if cap:
            return int(cap)
    except Exception:
        pass
    return 64 << 20


def _pick_tk_ff(d_ff):
    """Largest 128-multiple divisor of d_ff that is strictly smaller than d_ff."""
    for cand in (2048, 1024, 512, 256, 128):
        if cand < d_ff and d_ff % cand == 0:
            return cand
    return None


# --------------------------------------------------------------------------- #
# Kernels
# --------------------------------------------------------------------------- #
def _residual_layer_norm(x, y, g_ref, bt_ref, o_ref):
    # Residual + LayerNorm over d_model, all in f32 (two-pass variance).
    z = x.astype(jnp.float32) + y
    mean = jnp.mean(z, axis=-1, keepdims=True)
    zc = z - mean
    var = jnp.mean(zc * zc, axis=-1, keepdims=True)
    zn = zc * lax.rsqrt(var + LN_EPS)                    # rsqrt -> EUP slot
    o_ref[...] = (zn * g_ref[...].astype(jnp.float32)
                  + bt_ref[...].astype(jnp.float32)).astype(o_ref.dtype)


def _pwff_resident_kernel(x_ref, w1_ref, b1_ref, w2_ref, b2_ref, g_ref, bt_ref,
                          o_ref):
    """Full d_ff per grid step; weights are VMEM resident."""
    x = x_ref[...]
    # fc1 + ReLU: MXU matmul in the operand dtype, f32 accumulation.
    h = jnp.dot(x, w1_ref[...], preferred_element_type=jnp.float32)
    h = jnp.maximum(h + b1_ref[...].astype(jnp.float32), 0.0)
    # dropout_2 / dropout are identity in eval mode.
    y = jnp.dot(h.astype(w2_ref.dtype), w2_ref[...],
                preferred_element_type=jnp.float32)
    y = y + b2_ref[...].astype(jnp.float32)
    _residual_layer_norm(x, y, g_ref, bt_ref, o_ref)


def _pwff_chunked_kernel(x_ref, w1_ref, b1_ref, w2_ref, b2_ref, g_ref, bt_ref,
                         o_ref, acc_ref):
    """d_ff streamed in chunks; f32 (tm, d_model) accumulator in VMEM."""
    k = pl.program_id(1)

    @pl.when(k == 0)
    def _():
        acc_ref[...] = jnp.zeros_like(acc_ref)

    x = x_ref[...]
    h = jnp.dot(x, w1_ref[...], preferred_element_type=jnp.float32)
    h = jnp.maximum(h + b1_ref[...].astype(jnp.float32), 0.0)   # ReLU is per-column
    acc_ref[...] += jnp.dot(h.astype(w2_ref.dtype), w2_ref[...],
                            preferred_element_type=jnp.float32)

    @pl.when(k == pl.num_programs(1) - 1)
    def _():
        y = acc_ref[...] + b2_ref[...].astype(jnp.float32)
        _residual_layer_norm(x, y, g_ref, bt_ref, o_ref)


# --------------------------------------------------------------------------- #
# Wrapper
# --------------------------------------------------------------------------- #
def position_wise_feed_forward(x, w1, b1, w2, b2, gamma, beta, *,
                               tm=512,
                               compute_dtype=jnp.bfloat16,
                               tk_ff=None,
                               single_buffer_weights=True,
                               vmem_budget_bytes=None):
    """out = LayerNorm(x + relu(x@W1 + b1)@W2 + b2) (eval-mode dropouts).

    x: (B, S, d_model); w1: (d_model, d_ff); w2: (d_ff, d_model).
    compute_dtype: MXU operand dtype for x/W1/W2 (None => keep native dtype).
      Note: with bf16 operands the residual uses the bf16-rounded x — expected
      mixed-precision drift vs an f32 reference.
    tk_ff: explicit d_ff chunk (None => auto: resident weights if they fit).
    """
    B, S, d_model = x.shape
    d_ff = w1.shape[1]
    assert w1.shape == (d_model, d_ff)
    assert w2.shape == (d_ff, d_model)
    N = B * S
    out_dtype = x.dtype

    cd = jnp.dtype(compute_dtype) if compute_dtype is not None else jnp.dtype(x.dtype)
    cd_it = cd.itemsize
    out_it = jnp.dtype(out_dtype).itemsize

    # TODO(synk): if d_model is not a multiple of 128, pad W2/b2/gamma/beta once
    # at init (and mask the LN reduction) so the output store is a full-width
    # unmasked vst instead of vst.msk.

    x2d = x.reshape(N, d_model)
    if x2d.dtype != cd:
        x2d = x2d.astype(cd)
    w1c = w1 if w1.dtype == cd else w1.astype(cd)
    w2c = w2 if w2.dtype == cd else w2.astype(cd)
    # Biases / LN params stay in their own (typically f32) dtype: they are
    # consumed in f32 inside the kernel and are tiny in VMEM.
    b1_2d = b1.reshape(1, d_ff)
    b2_2d = b2.reshape(1, d_model)
    g_2d = gamma.reshape(1, d_model)
    bt_2d = beta.reshape(1, d_model)

    # ---- Row tile: MXU/lane aligned, clamped to the (8-padded) row count. ----
    tm = int(tm)
    tm = _round_up(tm, 128) if tm >= 128 else _round_up(max(tm, 8), 8)
    tm = min(tm, _round_up(N, 8))
    if N > 256 and _cdiv(N, tm) < 2:
        # v7x has 2 TensorCores: give the "parallel" row axis at least 2 tiles.
        tm = max(128, _round_up(_cdiv(N, 2), 128))
    n_tiles = _cdiv(N, tm)   # last tile may be partial -> Pallas masks it.

    # ---- VMEM budgeting / path selection. ----
    cap = _vmem_capacity_bytes()
    budget = int(vmem_budget_bytes) if vmem_budget_bytes is not None else (3 * cap) // 4
    nw = 1 if single_buffer_weights else 2
    small_bytes = (b1.size + b2.size + gamma.size + beta.size) * 4

    def resident_footprint():
        return (2 * d_model * d_ff * cd_it * nw           # W1 + W2 (resident)
                + small_bytes * nw
                + 2 * tm * d_model * cd_it                # x tile double buffer
                + 2 * tm * d_model * out_it               # out tile double buffer
                + tm * d_ff * 4                           # f32 ReLU intermediate
                + 2 * tm * d_model * 4)                   # f32 LN temps

    use_chunked = tk_ff is not None
    if not use_chunked and resident_footprint() > budget:
        tk_ff = _pick_tk_ff(d_ff)
        use_chunked = tk_ff is not None
    if use_chunked:
        tk_ff = int(tk_ff)
        assert d_ff % tk_ff == 0, "tk_ff must divide d_ff"
        assert tk_ff == d_ff or tk_ff % 128 == 0, "tk_ff must be a multiple of 128"
        n_k = d_ff // tk_ff
        footprint = (2 * 2 * d_model * tk_ff * cd_it      # W1/W2 chunk double buffers
                     + 2 * tk_ff * 4 + small_bytes
                     + 2 * tm * d_model * cd_it
                     + 2 * tm * d_model * out_it
                     + tm * tk_ff * 4                     # f32 ReLU chunk
                     + tm * d_model * 4                   # f32 accumulator scratch
                     + 2 * tm * d_model * 4)
    else:
        footprint = resident_footprint()

    vmem_limit = max(16 << 20, min(int(footprint) + (8 << 20), cap - (4 << 20)))

    const_kw = dict(pipeline_mode=pl.Buffered(1)) if single_buffer_weights else {}

    cost = pl.CostEstimate(
        flops=4 * N * d_model * d_ff + 10 * N * d_model,
        transcendentals=N,                                # one rsqrt per row
        bytes_accessed=int(N * d_model * (cd_it + out_it)
                           + 2 * d_model * d_ff * cd_it + small_bytes),
    )

    if use_chunked:
        grid_spec = pltpu.PrefetchScalarGridSpec(
            num_scalar_prefetch=0,
            grid=(n_tiles, n_k),                          # reduction axis last
            in_specs=[
                pl.BlockSpec((tm, d_model), lambda i, k: (i, 0)),        # x
                pl.BlockSpec((d_model, tk_ff), lambda i, k: (0, k)),     # W1 chunk
                pl.BlockSpec((1, tk_ff), lambda i, k: (0, k)),           # b1 chunk
                pl.BlockSpec((tk_ff, d_model), lambda i, k: (k, 0)),     # W2 chunk
                pl.BlockSpec((1, d_model), lambda i, k: (0, 0), **const_kw),  # b2
                pl.BlockSpec((1, d_model), lambda i, k: (0, 0), **const_kw),  # gamma
                pl.BlockSpec((1, d_model), lambda i, k: (0, 0), **const_kw),  # beta
            ],
            out_specs=pl.BlockSpec((tm, d_model), lambda i, k: (i, 0)),
            scratch_shapes=[pltpu.VMEM((tm, d_model), jnp.float32)],
        )
        kernel = _pwff_chunked_kernel
        dims = ("parallel", "arbitrary")
    else:
        grid_spec = pltpu.PrefetchScalarGridSpec(
            num_scalar_prefetch=0,
            grid=(n_tiles,),
            in_specs=[
                pl.BlockSpec((tm, d_model), lambda i: (i, 0)),           # x
                pl.BlockSpec((d_model, d_ff), lambda i: (0, 0), **const_kw),  # W1
                pl.BlockSpec((1, d_ff), lambda i: (0, 0), **const_kw),        # b1
                pl.BlockSpec((d_ff, d_model), lambda i: (0, 0), **const_kw),  # W2
                pl.BlockSpec((1, d_model), lambda i: (0, 0), **const_kw),     # b2
                pl.BlockSpec((1, d_model), lambda i: (0, 0), **const_kw),     # gamma
                pl.BlockSpec((1, d_model), lambda i: (0, 0), **const_kw),     # beta
            ],
            out_specs=pl.BlockSpec((tm, d_model), lambda i: (i, 0)),
        )
        kernel = _pwff_resident_kernel
        dims = ("parallel",)

    out = pl.pallas_call(
        kernel,
        out_shape=jax.ShapeDtypeStruct((N, d_model), out_dtype),
        grid_spec=grid_spec,
        compiler_params=pltpu.CompilerParams(
            dimension_semantics=dims,
            vmem_limit_bytes=vmem_limit,
        ),
        cost_estimate=cost,
    )(x2d, w1c, b1_2d, w2c, b2_2d, g_2d, bt_2d)

    return out.reshape(B, S, d_model)


# --------------------------------------------------------------------------- #
# Reference + demo
# --------------------------------------------------------------------------- #
def _reference(x, w1, b1, w2, b2, gamma, beta):
    h = jnp.maximum(x @ w1 + b1, 0.0)
    z = x + (h @ w2 + b2)
    mean = jnp.mean(z, axis=-1, keepdims=True)
    var = jnp.mean((z - mean) ** 2, axis=-1, keepdims=True)
    return (z - mean) / jnp.sqrt(var + LN_EPS) * gamma + beta


def _make_params(key, d_model, d_ff):
    k1, k2, k3, k4, k5, k6 = jax.random.split(key, 6)
    lim1 = 1.0 / d_model ** 0.5
    lim2 = 1.0 / d_ff ** 0.5
    w1 = jax.random.uniform(k1, (d_model, d_ff), jnp.float32, -lim1, lim1)
    b1 = jax.random.uniform(k2, (d_ff,), jnp.float32, -lim1, lim1)
    w2 = jax.random.uniform(k3, (d_ff, d_model), jnp.float32, -lim2, lim2)
    b2 = jax.random.uniform(k4, (d_model,), jnp.float32, -lim2, lim2)
    # Non-trivial affine LN params so the gamma/beta application is checked.
    gamma = 1.0 + 0.1 * jax.random.normal(k5, (d_model,), jnp.float32)
    beta = 0.1 * jax.random.normal(k6, (d_model,), jnp.float32)
    return w1, b1, w2, b2, gamma, beta


if __name__ == "__main__":
    key = jax.random.PRNGKey(0)
    kp, kp2, kx1, kx2 = jax.random.split(key, 4)

    # Small, module-consistent shapes: batch=2, seq=8, d_model=32, d_ff=64.
    B, S, d_model, d_ff = 2, 8, 32, 64
    w1, b1, w2, b2, gamma, beta = _make_params(kp, d_model, d_ff)
    x = jax.random.normal(kx1, (B, S, d_model), dtype=jnp.float32)
    ref = _reference(x, w1, b1, w2, b2, gamma, beta)

    # 1) f32 compute path (resident weights, Buffered(1)) — exact vs reference.
    out = position_wise_feed_forward(x, w1, b1, w2, b2, gamma, beta,
                                     compute_dtype=jnp.float32)
    out = jax.block_until_ready(out)
    assert out.shape == (B, S, d_model)
    assert jnp.allclose(out, ref, atol=1e-5, rtol=1e-5), "mismatch (f32 resident)"

    # 2) default bf16 fast path — loose tolerance (bf16 operands, f32 accum).
    out_bf = position_wise_feed_forward(x, w1, b1, w2, b2, gamma, beta)
    out_bf = jax.block_until_ready(out_bf)
    assert out_bf.dtype == x.dtype
    assert jnp.allclose(out_bf, ref, atol=5e-2, rtol=5e-2), "mismatch (bf16)"

    # 3) d_ff-chunked accumulator path (forced tk_ff, 2 chunks, f32 exactness).
    d_ff_big = 256
    w1b, b1b, w2b, b2b, gb, bb = _make_params(kp2, d_model, d_ff_big)
    out_ck = position_wise_feed_forward(x, w1b, b1b, w2b, b2b, gb, bb,
                                        compute_dtype=jnp.float32, tk_ff=128)
    out_ck = jax.block_until_ready(out_ck)
    ref_ck = _reference(x, w1b, b1b, w2b, b2b, gb, bb)
    assert jnp.allclose(out_ck, ref_ck, atol=1e-4, rtol=1e-4), "mismatch (chunked)"

    # 4) ragged row count (N=18) + forced small tile -> multi-tile grid with a
    #    partial (masked) tail block, no host-side padding.
    x2 = jax.random.normal(kx2, (B, 9, d_model), dtype=jnp.float32)
    out2 = position_wise_feed_forward(x2, w1, b1, w2, b2, gamma, beta,
                                      compute_dtype=jnp.float32, tm=8)
    out2 = jax.block_until_ready(out2)
    ref2 = _reference(x2, w1, b1, w2, b2, gamma, beta)
    assert out2.shape == (B, 9, d_model)
    assert jnp.allclose(out2, ref2, atol=1e-5, rtol=1e-5), "mismatch (ragged)"

    print("KERNEL_OK")
</pallas_src>

<mosaic_0001>
module attributes {stable_mosaic.version = 11 : i64} {
  func.func @_pwff_resident_kernel(%arg0: i32, %arg1: memref<16x32xf32, #tpu.memory_space<vmem>>, %arg2: memref<32x64xf32, #tpu.memory_space<vmem>>, %arg3: memref<1x64xf32, #tpu.memory_space<vmem>>, %arg4: memref<64x32xf32, #tpu.memory_space<vmem>>, %arg5: memref<1x32xf32, #tpu.memory_space<vmem>>, %arg6: memref<1x32xf32, #tpu.memory_space<vmem>>, %arg7: memref<1x32xf32, #tpu.memory_space<vmem>>, %arg8: memref<16x32xf32, #tpu.memory_space<vmem>>) attributes {dimension_semantics = [#tpu.dimension_semantics<parallel>], iteration_bounds = array<i64: 1>, scalar_prefetch = 0 : i64, scratch_operands = 0 : i64, tpu.core_type = #tpu.core_type<tc>, window_params = [{transform_indices = @transform_0, window_bounds = array<i64: 16, 32>}, {pipeline_mode = #tpu.pipeline_mode<synchronous>, transform_indices = @transform_1, window_bounds = array<i64: 32, 64>}, {pipeline_mode = #tpu.pipeline_mode<synchronous>, transform_indices = @transform_2, window_bounds = array<i64: 1, 64>}, {pipeline_mode = #tpu.pipeline_mode<synchronous>, transform_indices = @transform_3, window_bounds = array<i64: 64, 32>}, {pipeline_mode = #tpu.pipeline_mode<synchronous>, transform_indices = @transform_4, window_bounds = array<i64: 1, 32>}, {pipeline_mode = #tpu.pipeline_mode<synchronous>, transform_indices = @transform_5, window_bounds = array<i64: 1, 32>}, {pipeline_mode = #tpu.pipeline_mode<synchronous>, transform_indices = @transform_6, window_bounds = array<i64: 1, 32>}, {transform_indices = @transform_7, window_bounds = array<i64: 16, 32>}]} {
    %c0 = arith.constant 0 : index
    %c0_0 = arith.constant 0 : index
    %0 = vector.load %arg1[%c0, %c0_0] : memref<16x32xf32, #tpu.memory_space<vmem>>, vector<16x32xf32>
    %c0_1 = arith.constant 0 : index
    %c0_2 = arith.constant 0 : index
    %1 = vector.load %arg2[%c0_1, %c0_2] : memref<32x64xf32, #tpu.memory_space<vmem>>, vector<32x64xf32>
    %cst = arith.constant dense<0.000000e+00> : vector<16x64xf32>
    %2 = tpu.matmul %0, %1, %cst {dimension_numbers = #tpu.dot_dimension_numbers<[1], [0], [0], [1], [0, 0, 1, 1], [], []>} : vector<16x32xf32>, vector<32x64xf32>, vector<16x64xf32> -> vector<16x64xf32>
    %c0_3 = arith.constant 0 : index
    %c0_4 = arith.constant 0 : index
    %3 = vector.load %arg3[%c0_3, %c0_4] : memref<1x64xf32, #tpu.memory_space<vmem>>, vector<1x64xf32>
    %4 = vector.broadcast %3 : vector<1x64xf32> to vector<16x64xf32>
    %5 = arith.addf %2, %4 : vector<16x64xf32>
    %cst_5 = arith.constant 0.000000e+00 : f32
    %6 = vector.broadcast %cst_5 : f32 to vector<16x64xf32>
    %7 = arith.maximumf %5, %6 : vector<16x64xf32>
    %c0_6 = arith.constant 0 : index
    %c0_7 = arith.constant 0 : index
    %8 = vector.load %arg4[%c0_6, %c0_7] : memref<64x32xf32, #tpu.memory_space<vmem>>, vector<64x32xf32>
    %cst_8 = arith.constant dense<0.000000e+00> : vector<16x32xf32>
    %9 = tpu.matmul %7, %8, %cst_8 {dimension_numbers = #tpu.dot_dimension_numbers<[1], [0], [0], [1], [0, 0, 1, 1], [], []>} : vector<16x64xf32>, vector<64x32xf32>, vector<16x32xf32> -> vector<16x32xf32>
    %c0_9 = arith.constant 0 : index
    %c0_10 = arith.constant 0 : index
    %10 = vector.load %arg5[%c0_9, %c0_10] : memref<1x32xf32, #tpu.memory_space<vmem>>, vector<1x32xf32>
    %11 = vector.broadcast %10 : vector<1x32xf32> to vector<16x32xf32>
    %12 = arith.addf %9, %11 : vector<16x32xf32>
    %13 = arith.addf %0, %12 : vector<16x32xf32>
    %cst_11 = arith.constant dense<0.000000e+00> : vector<16xf32>
    %14 = vector.multi_reduction <add>, %13, %cst_11 [1] : vector<16x32xf32> to vector<16xf32>
    %15 = vector.shape_cast %14 : vector<16xf32> to vector<16x1xf32>
    %cst_12 = arith.constant 3.200000e+01 : f32
    %16 = vector.broadcast %cst_12 : f32 to vector<16x1xf32>
    %17 = arith.divf %15, %16 : vector<16x1xf32>
    %18 = vector.broadcast %17 : vector<16x1xf32> to vector<16x32xf32>
    %19 = arith.subf %13, %18 : vector<16x32xf32>
    %20 = arith.mulf %19, %19 : vector<16x32xf32>
    %cst_13 = arith.constant dense<0.000000e+00> : vector<16xf32>
    %21 = vector.multi_reduction <add>, %20, %cst_13 [1] : vector<16x32xf32> to vector<16xf32>
    %22 = vector.shape_cast %21 : vector<16xf32> to vector<16x1xf32>
    %cst_14 = arith.constant 3.200000e+01 : f32
    %23 = vector.broadcast %cst_14 : f32 to vector<16x1xf32>
    %24 = arith.divf %22, %23 : vector<16x1xf32>
    %cst_15 = arith.constant 9.99999974E-6 : f32
    %25 = vector.broadcast %cst_15 : f32 to vector<16x1xf32>
    %26 = arith.addf %24, %25 : vector<16x1xf32>
    %27 = math.rsqrt %26 : vector<16x1xf32>
    %28 = vector.broadcast %27 : vector<16x1xf32> to vector<16x32xf32>
    %29 = arith.mulf %19, %28 : vector<16x32xf32>
    %c0_16 = arith.constant 0 : index
    %c0_17 = arith.constant 0 : index
    %30 = vector.load %arg6[%c0_16, %c0_17] : memref<1x32xf32, #tpu.memory_space<vmem>>, vector<1x32xf32>
    %31 = vector.broadcast %30 : vector<1x32xf32> to vector<16x32xf32>
    %32 = arith.mulf %29, %31 : vector<16x32xf32>
    %c0_18 = arith.constant 0 : index
    %c0_19 = arith.constant 0 : index
    %33 = vector.load %arg7[%c0_18, %c0_19] : memref<1x32xf32, #tpu.memory_space<vmem>>, vector<1x32xf32>
    %34 = vector.broadcast %33 : vector<1x32xf32> to vector<16x32xf32>
    %35 = arith.addf %32, %34 : vector<16x32xf32>
    %c0_20 = arith.constant 0 : index
    %c0_21 = arith.constant 0 : index
    %36 = vector.load %arg8[%c0_20, %c0_21] : memref<16x32xf32, #tpu.memory_space<vmem>>, vector<16x32xf32>
    tpu.vector_store %arg8[%c0_20, %c0_21], %35 {strides = array<i32>} : memref<16x32xf32, #tpu.memory_space<vmem>>, vector<16x32xf32>,
    return
  }
  func.func @transform_0(%arg0: i32) -> (i32, i32) {
    %c0_i32 = arith.constant 0 : i32
    %c0_i32_0 = arith.constant 0 : i32
    return %arg0, %c0_i32 : i32, i32
  }
  func.func @transform_1(%arg0: i32) -> (i32, i32) {
    %c0_i32 = arith.constant 0 : i32
    %c0_i32_0 = arith.constant 0 : i32
    %c0_i32_1 = arith.constant 0 : i32
    return %c0_i32, %c0_i32_0 : i32, i32
  }
  func.func @transform_2(%arg0: i32) -> (i32, i32) {
    %c0_i32 = arith.constant 0 : i32
    %c0_i32_0 = arith.constant 0 : i32
    %c0_i32_1 = arith.constant 0 : i32
    return %c0_i32, %c0_i32_0 : i32, i32
  }
  func.func @transform_3(%arg0: i32) -> (i32, i32) {
    %c0_i32 = arith.constant 0 : i32
    %c0_i32_0 = arith.constant 0 : i32
    %c0_i32_1 = arith.constant 0 : i32
    return %c0_i32, %c0_i32_0 : i32, i32
  }
  func.func @transform_4(%arg0: i32) -> (i32, i32) {
    %c0_i32 = arith.constant 0 : i32
    %c0_i32_0 = arith.constant 0 : i32
    %c0_i32_1 = arith.constant 0 : i32
    return %c0_i32, %c0_i32_0 : i32, i32
  }
  func.func @transform_5(%arg0: i32) -> (i32, i32) {
    %c0_i32 = arith.constant 0 : i32
    %c0_i32_0 = arith.constant 0 : i32
    %c0_i32_1 = arith.constant 0 : i32
    return %c0_i32, %c0_i32_0 : i32, i32
  }
  func.func @transform_6(%arg0: i32) -> (i32, i32) {
    %c0_i32 = arith.constant 0 : i32
    %c0_i32_0 = arith.constant 0 : i32
    %c0_i32_1 = arith.constant 0 : i32
    return %c0_i32, %c0_i32_0 : i32, i32
  }
  func.func @transform_7(%arg0: i32) -> (i32, i32) {
    %c0_i32 = arith.constant 0 : i32
    %c0_i32_0 = arith.constant 0 : i32
    return %arg0, %c0_i32 : i32, i32
  }
}

</mosaic_0001>

<bundles_post_ra>
// kernel: tpu_custom_call.1
= control target key start
LH: loop header
LB: loop body
LE: loop exit
PB: predicated region body
PF: predicated region fallthrough
CT: control target
= control target key end

     0   :  { %vm40_vm0 = vcmask 261120   ;;  %s512_s0 = inlined_call_operand.vmem [shape: f32[16,32], index: 0, kind: input, shape index: {}]   ;;  %s513_s1 = inlined_call_operand.vmem [shape: f32[32,64], index: 1, kind: input, shape index: {}]   ;;  %s514_s2 = inlined_call_operand.vmem [shape: f32[1,64], index: 2, kind: input, shape index: {}]   ;;  %s515_s3 = inlined_call_operand.vmem [shape: f32[64,32], index: 3, kind: input, shape index: {}]   ;;  %s516_s4 = inlined_call_operand.vmem [shape: f32[1,32], index: 4, kind: input, shape index: {}]   ;;  %s517_s5 = inlined_call_operand.vmem [shape: f32[1,32], index: 5, kind: input, shape index: {}]   ;;  %s518_s6 = inlined_call_operand.vmem [shape: f32[1,32], index: 6, kind: input, shape index: {}]   ;;  %s519_s7 = inlined_call_operand.hbm [shape: f32[16,32], index: 7, kind: output, shape index: {}]  }
   0x1   :  { %v29_v0 = vld [vmem:[%s513_s1] sm:$0xff]  ;;  %v30_v1 = vld [vmem:[%s513_s1 + $0x8] sm:$0xff]  ;;  %v31_v2 = vld [vmem:[%s513_s1 + $0x10] sm:$0xff] }
   0x2   :  { %v340_v3 = vpack.c.bf16 %v30_v1, %v29_v0  ;;  %v32_v4 = vld [vmem:[%s513_s1 + $0x18] sm:$0xff]  ;;  %v27_v5 = vld [vmem:[%s512_s0] sm:$0xff]  ;;  %v125_v8 = vld [vmem:[%s515_s3 + $0x8] sm:$0xff] }
   0x3   :  { %v344_v6 = vpack.c.bf16 %v32_v4, %v31_v2  ;;  %318 = vmatprep.mubr.msk.f32.mxu0 %vm40_vm0, %v27_v5  ;;  %v124_v7 = vld [vmem:[%s515_s3] sm:$0xff]  ;;  %v126_v9 = vld [vmem:[%s515_s3 + $0x10] sm:$0xff]  ;;  %v127_v11 = vld [vmem:[%s515_s3 + $0x18] sm:$0xff] }
   0x4   :  { %341 = vmatprep.subr.bf16.mxu0 %v340_v3  ;;  %v348_v10 = vpack.c.bf16 %v125_v8, %v124_v7  ;;  %v352_v12 = vpack.c.bf16 %v127_v11, %v126_v9  ;;  %v128_v13 = vld [vmem:[%s515_s3 + $0x20] sm:$0xff]  ;;  %v129_v14 = vld [vmem:[%s515_s3 + $0x28] sm:$0xff] }
   0x5   :  { %343 = vmatpush3.bf16.msra.mxu0 %v340_v3 }
   0x6   :  { %12 = vsyncpa [#allocation3], 0  ;;  %345 = vmatprep.subr.bf16.mxu0 %v344_v6  ;;  %349 = vmatprep.subr.bf16.mxu1 %v348_v10  ;;  %v356_v15 = vpack.c.bf16 %v129_v14, %v128_v13  ;;  %v28_v16 = vld [vmem:[%s512_s0 + $0x8] sm:$0xff]  ;;  %v130_v17 = vld [vmem:[%s515_s3 + $0x30] sm:$0xff]  ;;  %vm139_vm1 = vcmask 523264   ;;  %s395_s9 = smov [#allocation2]  }
   0x7   :  { %351 = vmatpush3.bf16.msra.mxu1 %v348_v10  ;;  %v131_v18 = vld [vmem:[%s515_s3 + $0x38] sm:$0xff]  ;;  %v286_v20 = vld [vmem:[%s514_s2] ss:$0 sm:$0xff]  ;;  %s275_s10 = sshll.u32 %s395_s9, 4  ;;  %s276_s10 = int_to_ptr.vmem [resolvable:$true] %s275_s10 }
   0x8   :  { %353 = vmatprep.subr.bf16.mxu1 %v352_v12  ;;  %v360_v19 = vpack.c.bf16 %v131_v18, %v130_v17  ;;  %v289_v27 = vld [vmem:[%s516_s4] ss:$0 sm:$0xff]  ;;  %s371_s11 = scalar_lea.vmem %s276_s10, 256  ;;  %p376_p1 = scmp.lt.s32.totalorder %s276_s10, %s276_s10 }
   0x9   :  { %347 = vmatpush3.bf16.msra.mxu0 %v344_v6  ;;  %v292_v53 = vld [vmem:[%s517_s5] ss:$0 sm:$0xff]  ;;  %p372_p0 = scmp.ne.s32.totalorder %s276_s10, %s371_s11  ;;  %p377_p2 = scmp.lt.s32.totalorder %s371_s11, %s371_s11 }
   0xa   :  { %v293_v55 = vld [vmem:[%s518_s6] ss:$0 sm:$0xff] }
   0xb   :  { %355 = vmatpush3.bf16.msra.mxu1 %v352_v12  ;;  %p378_p3 = por %p377_p2, %p376_p1 }
   0xc   :  { %319 = vmatmul.mubr.msk.f32.vlgmr.msra.gmra.mrb[0].mxu0 %vm40_vm0, %v28_v16  ;;  %357 = vmatprep.subr.bf16.mxu1 %v356_v15 }
   0xd   :  { %p379_p4 = pnand %p378_p3, %p372_p0 }
   0xf   :  { %359 = vmatpush3.bf16.msra.mxu1 %v356_v15 }
  0x10   :  { %361 = vmatprep.subr.bf16.mxu1 %v360_v19 }
  0x13   :  { %363 = vmatpush3.bf16.msra.mxu1 %v360_v19 }
  0xdf   :  { %v320_v21 = vpop.f32.mrb[0].mxu0 }
  0xe0   :  { %v119_v22 = vadd.f32 %v320_v21, %v286_v20  ;;  %v113_v23 = vpop.f32.mrb[1].mxu0 }
  0xe1   :  { %v114_v24 = vadd.f32 %v286_v20, %v113_v23 }
  0xe2   :  { %v123_v26 = vmax.f32 %v119_v22, 0.0 }
  0xe3   :  { %v122_v25 = vmax.f32 %v114_v24, 0.0 }
  0xe5   :  { %337 = vmatprep.mubr.msk.f32.mxu1 %vm139_vm1, %v122_v25 }
  0xe6   :  { %338 = vmatmul.mubr.msk.f32.vlgmr.msra.gmra.mrb[0].mxu1 %vm139_vm1, %v123_v26 }
 0x1b9   :  { %v339_v28 = vpop.f32.mrb[0].mxu1 }
 0x1ba   :  { %v212_v29 = vpop.f32.mrb[1].mxu1  ;;  %v218_v30 = vadd.f32 %v339_v28, %v289_v27 }
 0x1bb   :  { %v213_v31 = vadd.f32 %v289_v27, %v212_v29 }
 0x1bc   :  { %v222_v34 = vadd.f32 %v218_v30, %v28_v16 }
 0x1bd   :  { %v221_v32 = vadd.f32 %v213_v31, %v27_v5 }
 0x1be   :  { %v226_v35 = vsel %vm40_vm0, %v222_v34, 0.0 }
 0x1bf   :  { %v223_v33 = vsel %vm40_vm0, %v221_v32, 0.0 }
 0x1c0   :  { %224 = vadd.xlane.f32.xlu0 %v223_v33 }
 0x1c4   :  { %227 = vadd.xlane.f32.xlu0 %v226_v35 }
 0x24d   :  { %v225_v36 = vpop.xlane.xlu0 %224 }
 0x24e   :  { %v230_v37 = vmul.f32 0.03125, %v225_v36 }
 0x250   :  { %v232_v38 = vsub.f32 %v221_v32, %v230_v37 }
 0x251   :  { %v228_v39 = vpop.xlane.xlu0 %227 }
 0x252   :  { %v231_v40 = vmul.f32 0.03125, %v228_v39  ;;  %v234_v41 = vmul.f32 %v232_v38, %v232_v38 }
 0x254   :  { %v233_v42 = vsub.f32 %v222_v34, %v231_v40  ;;  %v236_v43 = vsel %vm40_vm0, %v234_v41, 0.0 }
 0x255   :  { %237 = vadd.xlane.f32.xlu1 %v236_v43 }
 0x256   :  { %v235_v44 = vmul.f32 %v233_v42, %v233_v42 }
 0x258   :  { %v239_v45 = vsel %vm40_vm0, %v235_v44, 0.0 }
 0x259   :  { %240 = vadd.xlane.f32.xlu1 %v239_v45 }
 0x2e2   :  { %v238_v46 = vpop.xlane.xlu1 %237 }
 0x2e3   :  { %v242_v47 = vmul.f32 0.03125, %v238_v46 }
 0x2e5   :  { %v244_v48 = vadd.f32 1e-05, %v242_v47 }
 0x2e6   :  { %v241_v49 = vpop.xlane.xlu1 %240 }
 0x2e7   :  { %367 = vrsqrt.f32 %v244_v48  ;;  %v243_v50 = vmul.f32 0.03125, %v241_v49 }
 0x2e9   :  { %v245_v51 = vadd.f32 1e-05, %v243_v50 }
 0x2eb   :  { %369 = vrsqrt.f32 %v245_v51 }
 0x2f1   :  { %v368_v52 = vpop.eup %367 }
 0x2f2   :  { %v248_v54 = vmul.f32 %v368_v52, %v232_v38 }
 0x2f4   :  { %v257_v56 = vmul.f32 %v292_v53, %v248_v54 }
 0x2f5   :  { %v370_v57 = vpop.eup %369 }
 0x2f6   :  { %v249_v58 = vmul.f32 %v370_v57, %v233_v42  ;;  %v266_v59 = vadd.f32 %v293_v55, %v257_v56 }
 0x2f8   :  { %v258_v60 = vmul.f32 %v292_v53, %v249_v58  ;;  %268 = vst.msk [vmem:[#allocation2] sm:$0xff] %vm40_vm0, %v266_v59 }
 0x2fa   :  { %v267_v61 = vadd.f32 %v293_v55, %v258_v60 }
 0x2fc   :  { %269 = vst.msk [vmem:[#allocation2 + $0x8] sm:$0xff] %vm40_vm0, %v267_v61 }
 0x2fd   :  { %382 = shalt.err (!%p379_p4)
}
 0x2fe   :  { %s383_s12 = scalar_lea.hbm %s519_s7, 256 }
 0x2ff   :  { %p384_p5 = scmp.ne.s32.totalorder %s519_s7, %s383_s12  ;;  %p387_p6 = scmp.lt.u32.totalorder %s383_s12, %s519_s7 }
 0x301   :  { %p389_p7 = pnand %p387_p6, %p384_p5 }
 0x303   :  { %392 = shalt.err (!%p389_p7)
}
 0x304   :  { %s396_s1 = smov 128   ;;  %s397_s17 = smov 8  }
 0x305   :  { %281 = dma.vmem_to_hbm [thread:$0]  %s276_s10, 256, %s519_s7, [#allocation3], %s396_s1, %s396_s1, %s397_s17  }
 0x306   :  { %393 = dma.done.wait [#allocation3], 256  }
 0x307   :  { %394 = vsyncadd [#allocation3], 4294967040 }
 0x308   :  { %285 = vsyncpa [#allocation3], 1 }

</bundles_post_ra>
